<compile_context>
chip_gen: v5e
topology: v5e:2x2
jax: 0.10.0
libtpu: 0.0.40
codegen_flags: <defaults>
</compile_context>

<pallas_src>
import functools

import jax
import jax.numpy as jnp
from jax.experimental import pallas as pl
from jax.experimental.pallas import tpu as pltpu

HIDDEN = 64      # logical hidden size, matches nn.Linear(input_size, 64)
LANE = 128       # TPU lane width
SUBLANE = 8


def _round_up(n, m):
    return ((n + m - 1) // m) * m


def mlp_kernel(x_ref, w1_ref, w2_ref, w3_ref, b_ref, o_ref, *,
               hid_p, out_dim, compute_dtype):
    # One (tile_b, input_size) tile of x per grid step (auto-pipelined);
    # weights / stacked biases are VMEM-resident across the whole grid.
    x = x_ref[...].astype(compute_dtype)

    # Stacked biases (f32): row 0 = b1, row 1 = b2, row 2 = b3.
    b1 = b_ref[0:1, :hid_p]
    b2 = b_ref[1:2, :hid_p]
    b3 = b_ref[2:3, :out_dim]

    # Dots accumulate in f32; bias add + ReLU stay f32 (v5e-safe), activations
    # are cast back to compute_dtype only as the next MXU LHS.
    h1 = jnp.dot(x, w1_ref[...], preferred_element_type=jnp.float32) + b1
    h1 = jnp.maximum(h1, 0.0).astype(compute_dtype)

    h2 = jnp.dot(h1, w2_ref[...], preferred_element_type=jnp.float32) + b2
    h2 = jnp.maximum(h2, 0.0).astype(compute_dtype)

    out = jnp.dot(h2, w3_ref[...], preferred_element_type=jnp.float32) + b3
    o_ref[...] = out.astype(o_ref.dtype)


def prepare_params(params, input_size, output_size, compute_dtype=jnp.float32):
    """One-time prep: pad only the hidden dim to 128 lanes, stack the biases.

    Weights are stored as (in, out) in `compute_dtype`; biases stay f32.
    """
    w1, b1, w2, b2, w3, b3 = params
    hid_p = _round_up(HIDDEN, LANE)          # 64 -> 128
    nb = max(hid_p, output_size)

    w1p = (jnp.zeros((input_size, hid_p), compute_dtype)
           .at[:, :HIDDEN].set(w1.astype(compute_dtype)))
    w2p = (jnp.zeros((hid_p, hid_p), compute_dtype)
           .at[:HIDDEN, :HIDDEN].set(w2.astype(compute_dtype)))
    w3p = (jnp.zeros((hid_p, output_size), compute_dtype)
           .at[:HIDDEN, :].set(w3.astype(compute_dtype)))

    bstack = jnp.zeros((3, nb), jnp.float32)
    bstack = bstack.at[0, :HIDDEN].set(b1)
    bstack = bstack.at[1, :HIDDEN].set(b2)
    bstack = bstack.at[2, :output_size].set(b3)

    return (w1p, w2p, w3p, bstack)


def mlp_forward(x, padded_params, input_size, output_size, *,
                tile_b=1024, compute_dtype=jnp.float32):
    w1p, w2p, w3p, bstack = padded_params
    B = x.shape[0]
    hid_p = w2p.shape[0]

    # Batch tile: sublane-aligned; for large B keep >= 2 grid steps so the
    # "parallel" axis gives both v7x TensorCores work.
    if B <= SUBLANE:
        tb = SUBLANE
    else:
        tb = max(SUBLANE, min(tile_b, _round_up(pl.cdiv(B, 2), SUBLANE)))
    grid = (pl.cdiv(B, tb),)

    itemsize = jnp.dtype(x.dtype).itemsize
    w_itemsize = jnp.dtype(w1p.dtype).itemsize
    flops = 2 * B * (input_size * HIDDEN + HIDDEN * HIDDEN + HIDDEN * output_size)
    bytes_accessed = (
        B * input_size * itemsize + B * output_size * itemsize
        + (w1p.size + w2p.size + w3p.size) * w_itemsize
        + bstack.size * 4
    )

    return pl.pallas_call(
        functools.partial(mlp_kernel, hid_p=hid_p, out_dim=output_size,
                          compute_dtype=compute_dtype),
        out_shape=jax.ShapeDtypeStruct((B, output_size), x.dtype),
        grid=grid,
        in_specs=[
            pl.BlockSpec((tb, input_size), lambda i: (i, 0)),   # x: pipelined, unpadded
            pl.BlockSpec(w1p.shape, lambda i: (0, 0)),          # w1: VMEM-resident
            pl.BlockSpec(w2p.shape, lambda i: (0, 0)),          # w2: VMEM-resident
            pl.BlockSpec(w3p.shape, lambda i: (0, 0)),          # w3: VMEM-resident
            pl.BlockSpec(bstack.shape, lambda i: (0, 0)),       # stacked biases
        ],
        out_specs=pl.BlockSpec((tb, output_size), lambda i: (i, 0)),  # logical width
        compiler_params=pltpu.CompilerParams(
            dimension_semantics=("parallel",),       # megacore sharding on v7x
            vmem_limit_bytes=32 * 1024 * 1024,
        ),
        cost_estimate=pl.CostEstimate(
            flops=flops, transcendentals=0, bytes_accessed=bytes_accessed),
    )(x, w1p, w2p, w3p, bstack)


def init_params(key, input_size, output_size):
    """Deterministic init mimicking nn.Linear's uniform(-1/sqrt(in), 1/sqrt(in))."""
    def linear_init(k, fan_in, fan_out):
        kw, kb = jax.random.split(k)
        bound = 1.0 / jnp.sqrt(fan_in)
        w = jax.random.uniform(kw, (fan_in, fan_out), jnp.float32, -bound, bound)
        b = jax.random.uniform(kb, (fan_out,), jnp.float32, -bound, bound)
        return w, b

    k1, k2, k3 = jax.random.split(key, 3)
    w1, b1 = linear_init(k1, input_size, HIDDEN)
    w2, b2 = linear_init(k2, HIDDEN, HIDDEN)
    w3, b3 = linear_init(k3, HIDDEN, output_size)
    return (w1, b1, w2, b2, w3, b3)


def mlp_reference(x, params):
    """Pure-JAX reference for correctness check."""
    w1, b1, w2, b2, w3, b3 = params
    h = jax.nn.relu(x @ w1 + b1)
    h = jax.nn.relu(h @ w2 + b2)
    return h @ w3 + b3


if __name__ == "__main__":
    key = jax.random.PRNGKey(0)
    k_param, k_x, k_x2 = jax.random.split(key, 3)

    batch = 8
    input_size = 32
    output_size = 16

    params = init_params(k_param, input_size, output_size)
    x = jax.random.normal(k_x, (batch, input_size), jnp.float32)
    ref = mlp_reference(x, params)

    # --- f32 path (exact parity with the reference) ---
    params_f32 = prepare_params(params, input_size, output_size, jnp.float32)
    out = jax.block_until_ready(
        mlp_forward(x, params_f32, input_size, output_size))
    assert out.shape == (batch, output_size), out.shape
    assert jnp.allclose(out, ref, atol=1e-5, rtol=1e-5), "f32 mismatch vs reference"

    # --- bf16-MXU path (halves operand bytes on v6e/v7x; f32 accumulate) ---
    params_bf16 = prepare_params(params, input_size, output_size, jnp.bfloat16)
    out_bf16 = jax.block_until_ready(
        mlp_forward(x, params_bf16, input_size, output_size,
                    compute_dtype=jnp.bfloat16))
    assert jnp.allclose(out_bf16, ref, atol=5e-2, rtol=5e-2), "bf16 mismatch vs reference"

    # --- ragged / multi-step batch: exercises masked final block + 2-step grid ---
    big_batch = 200
    x_big = jax.random.normal(k_x2, (big_batch, input_size), jnp.float32)
    out_big = jax.block_until_ready(
        mlp_forward(x_big, params_f32, input_size, output_size))
    ref_big = mlp_reference(x_big, params)
    assert out_big.shape == (big_batch, output_size), out_big.shape
    assert jnp.allclose(out_big, ref_big, atol=1e-5, rtol=1e-5), "ragged-batch mismatch"

    print("KERNEL_OK")
</pallas_src>

<mosaic_0001>
module attributes {stable_mosaic.version = 11 : i64} {
  func.func @mlp_kernel(%arg0: i32, %arg1: memref<8x32xf32, #tpu.memory_space<vmem>>, %arg2: memref<32x128xf32, #tpu.memory_space<vmem>>, %arg3: memref<128x128xf32, #tpu.memory_space<vmem>>, %arg4: memref<128x16xf32, #tpu.memory_space<vmem>>, %arg5: memref<3x128xf32, #tpu.memory_space<vmem>>, %arg6: memref<8x16xf32, #tpu.memory_space<vmem>>) attributes {dimension_semantics = [#tpu.dimension_semantics<parallel>], iteration_bounds = array<i64: 1>, scalar_prefetch = 0 : i64, scratch_operands = 0 : i64, tpu.core_type = #tpu.core_type<tc>, window_params = [{transform_indices = @transform_0, window_bounds = array<i64: 8, 32>}, {pipeline_mode = #tpu.pipeline_mode<synchronous>, transform_indices = @transform_1, window_bounds = array<i64: 32, 128>}, {pipeline_mode = #tpu.pipeline_mode<synchronous>, transform_indices = @transform_2, window_bounds = array<i64: 128, 128>}, {pipeline_mode = #tpu.pipeline_mode<synchronous>, transform_indices = @transform_3, window_bounds = array<i64: 128, 16>}, {pipeline_mode = #tpu.pipeline_mode<synchronous>, transform_indices = @transform_4, window_bounds = array<i64: 3, 128>}, {transform_indices = @transform_5, window_bounds = array<i64: 8, 16>}]} {
    %c0 = arith.constant 0 : index
    %c0_0 = arith.constant 0 : index
    %0 = vector.load %arg1[%c0, %c0_0] : memref<8x32xf32, #tpu.memory_space<vmem>>, vector<8x32xf32>
    %c0_1 = arith.constant 0 : index
    %c0_2 = arith.constant 0 : index
    %1 = vector.load %arg5[%c0_1, %c0_2] : memref<3x128xf32, #tpu.memory_space<vmem>>, vector<1x128xf32>
    %c1 = arith.constant 1 : index
    %c0_3 = arith.constant 0 : index
    %2 = vector.load %arg5[%c1, %c0_3] : memref<3x128xf32, #tpu.memory_space<vmem>>, vector<1x128xf32>
    %c2 = arith.constant 2 : index
    %c0_4 = arith.constant 0 : index
    %3 = vector.load %arg5[%c2, %c0_4] : memref<3x128xf32, #tpu.memory_space<vmem>>, vector<1x16xf32>
    %c0_5 = arith.constant 0 : index
    %c0_6 = arith.constant 0 : index
    %4 = vector.load %arg2[%c0_5, %c0_6] : memref<32x128xf32, #tpu.memory_space<vmem>>, vector<32x128xf32>
    %cst = arith.constant dense<0.000000e+00> : vector<8x128xf32>
    %5 = tpu.matmul %0, %4, %cst {dimension_numbers = #tpu.dot_dimension_numbers<[1], [0], [0], [1], [0, 0, 1, 1], [], []>} : vector<8x32xf32>, vector<32x128xf32>, vector<8x128xf32> -> vector<8x128xf32>
    %6 = vector.broadcast %1 : vector<1x128xf32> to vector<8x128xf32>
    %7 = arith.addf %5, %6 : vector<8x128xf32>
    %cst_7 = arith.constant 0.000000e+00 : f32
    %8 = vector.broadcast %cst_7 : f32 to vector<8x128xf32>
    %9 = arith.maximumf %7, %8 : vector<8x128xf32>
    %c0_8 = arith.constant 0 : index
    %c0_9 = arith.constant 0 : index
    %10 = vector.load %arg3[%c0_8, %c0_9] : memref<128x128xf32, #tpu.memory_space<vmem>>, vector<128x128xf32>
    %cst_10 = arith.constant dense<0.000000e+00> : vector<8x128xf32>
    %11 = tpu.matmul %9, %10, %cst_10 {dimension_numbers = #tpu.dot_dimension_numbers<[1], [0], [0], [1], [0, 0, 1, 1], [], []>} : vector<8x128xf32>, vector<128x128xf32>, vector<8x128xf32> -> vector<8x128xf32>
    %12 = vector.broadcast %2 : vector<1x128xf32> to vector<8x128xf32>
    %13 = arith.addf %11, %12 : vector<8x128xf32>
    %cst_11 = arith.constant 0.000000e+00 : f32
    %14 = vector.broadcast %cst_11 : f32 to vector<8x128xf32>
    %15 = arith.maximumf %13, %14 : vector<8x128xf32>
    %c0_12 = arith.constant 0 : index
    %c0_13 = arith.constant 0 : index
    %16 = vector.load %arg4[%c0_12, %c0_13] : memref<128x16xf32, #tpu.memory_space<vmem>>, vector<128x16xf32>
    %cst_14 = arith.constant dense<0.000000e+00> : vector<8x16xf32>
    %17 = tpu.matmul %15, %16, %cst_14 {dimension_numbers = #tpu.dot_dimension_numbers<[1], [0], [0], [1], [0, 0, 1, 1], [], []>} : vector<8x128xf32>, vector<128x16xf32>, vector<8x16xf32> -> vector<8x16xf32>
    %18 = vector.broadcast %3 : vector<1x16xf32> to vector<8x16xf32>
    %19 = arith.addf %17, %18 : vector<8x16xf32>
    %c0_15 = arith.constant 0 : index
    %c0_16 = arith.constant 0 : index
    %20 = vector.load %arg6[%c0_15, %c0_16] : memref<8x16xf32, #tpu.memory_space<vmem>>, vector<8x16xf32>
    tpu.vector_store %arg6[%c0_15, %c0_16], %19 {strides = array<i32>} : memref<8x16xf32, #tpu.memory_space<vmem>>, vector<8x16xf32>,
    return
  }
  func.func @transform_0(%arg0: i32) -> (i32, i32) {
    %c0_i32 = arith.constant 0 : i32
    %c0_i32_0 = arith.constant 0 : i32
    return %arg0, %c0_i32 : i32, i32
  }
  func.func @transform_1(%arg0: i32) -> (i32, i32) {
    %c0_i32 = arith.constant 0 : i32
    %c0_i32_0 = arith.constant 0 : i32
    %c0_i32_1 = arith.constant 0 : i32
    return %c0_i32, %c0_i32_0 : i32, i32
  }
  func.func @transform_2(%arg0: i32) -> (i32, i32) {
    %c0_i32 = arith.constant 0 : i32
    %c0_i32_0 = arith.constant 0 : i32
    %c0_i32_1 = arith.constant 0 : i32
    return %c0_i32, %c0_i32_0 : i32, i32
  }
  func.func @transform_3(%arg0: i32) -> (i32, i32) {
    %c0_i32 = arith.constant 0 : i32
    %c0_i32_0 = arith.constant 0 : i32
    %c0_i32_1 = arith.constant 0 : i32
    return %c0_i32, %c0_i32_0 : i32, i32
  }
  func.func @transform_4(%arg0: i32) -> (i32, i32) {
    %c0_i32 = arith.constant 0 : i32
    %c0_i32_0 = arith.constant 0 : i32
    %c0_i32_1 = arith.constant 0 : i32
    return %c0_i32, %c0_i32_0 : i32, i32
  }
  func.func @transform_5(%arg0: i32) -> (i32, i32) {
    %c0_i32 = arith.constant 0 : i32
    %c0_i32_0 = arith.constant 0 : i32
    return %arg0, %c0_i32 : i32, i32
  }
}

</mosaic_0001>

<bundles_post_ra>
// kernel: tpu_custom_call.1
= control target key start
LH: loop header
LB: loop body
LE: loop exit
PB: predicated region body
PF: predicated region fallthrough
CT: control target
= control target key end

     0   :  { %10 = vsyncpa [#allocation3], 0  ;;  %s373_s0 = inlined_call_operand.vmem [shape: f32[8,32], index: 0, kind: input, shape index: {}]   ;;  %s374_s1 = inlined_call_operand.hbm [shape: f32[32,128], index: 1, kind: input, shape index: {}]   ;;  %s375_s2 = inlined_call_operand.vmem [shape: f32[128,128], index: 2, kind: input, shape index: {}]   ;;  %s376_s3 = inlined_call_operand.vmem [shape: f32[128,16], index: 3, kind: input, shape index: {}]   ;;  %s377_s4 = inlined_call_operand.vmem [shape: f32[3,128], index: 4, kind: input, shape index: {}]   ;;  %s378_s5 = inlined_call_operand.hbm [shape: f32[8,16], index: 5, kind: output, shape index: {}]  }
   0x1   :  { %11 = vsyncpa [#allocation4], 0  ;;  %s18_s20 = sshll.u32 %s374_s1, 4  ;;  %s225_s21 = smov [#allocation2]   ;;  %s19_s20 = int_to_ptr.hbm [resolvable:$true] %s18_s20 }
   0x2   :  { %s20_s22 = sshll.u32 %s225_s21, 4  ;;  %s226_s23 = smov 128   ;;  %s21_s22 = int_to_ptr.vmem [resolvable:$true] %s20_s22 }
   0x3   :  { %s227_s24 = smov 8  }
   0x4   :  { %26 = dma.hbm_to_vmem [thread:$0]  %s19_s20, 512, %s21_s22, [#allocation3], %s226_s23, %s226_s23, %s227_s24  }
   0x5   :  { %221 = dma.done.wait [#allocation3], 512  }
   0x6   :  { %222 = vsyncadd [#allocation3], 4294966784  ;;  %v44_v0 = vld [vmem:[#allocation2 + $0x18] sm:$0xff]  ;;  %v43_v1 = vld [vmem:[#allocation2 + $0x10] sm:$0xff]  ;;  %vm46_vm0 = vcmask 261120   ;;  %s228_s14 = smov [#allocation5]  }
   0x7   :  { %62 = vmatpush.msra.mxu0 %v44_v0  ;;  %v86_v2 = vld [vmem:[%s375_s2 + $0x78] sm:$0xff]  ;;  %v42_v3 = vld [vmem:[#allocation2 + $0x8] sm:$0xff]  ;;  %v85_v4 = vld [vmem:[%s375_s2 + $0x70] sm:$0xff]  ;;  %s153_s15 = sshll.u32 %s228_s14, 4  ;;  %s155_s18 = sshll.u32 %s378_s5, 4  ;;  %vm146_vm1 = vcmask 130048   ;;  %s154_s15 = int_to_ptr.vmem [resolvable:$true] %s153_s15  ;;  %s156_s18 = int_to_ptr.hbm [resolvable:$true] %s155_s18 }
   0x8   :  { %88 = vmatpush.msra.mxu1 %v86_v2  ;;  %v84_v5 = vld [vmem:[%s375_s2 + $0x68] sm:$0xff]  ;;  %v41_v6 = vld [vmem:[#allocation2] sm:$0xff]  ;;  %v82_v9 = vld [vmem:[%s375_s2 + $0x58] sm:$0xff] }
   0x9   :  { %63 = vmatpush.msra.mxu0 %v43_v1  ;;  %v37_v7 = vld [vmem:[%s373_s0] sm:$0xff]  ;;  %v81_v10 = vld [vmem:[%s375_s2 + $0x50] sm:$0xff]  ;;  %v80_v11 = vld [vmem:[%s375_s2 + $0x48] sm:$0xff] }
   0xa   :  { %89 = vmatpush.msra.mxu1 %v85_v4  ;;  %v83_v8 = vld [vmem:[%s375_s2 + $0x60] sm:$0xff]  ;;  %v78_v13 = vld [vmem:[%s375_s2 + $0x38] sm:$0xff]  ;;  %v77_v14 = vld [vmem:[%s375_s2 + $0x30] sm:$0xff] }
   0xb   :  { %64 = vmatpush.msra.mxu0 %v42_v3  ;;  %v79_v12 = vld [vmem:[%s375_s2 + $0x40] sm:$0xff]  ;;  %v76_v15 = vld [vmem:[%s375_s2 + $0x28] sm:$0xff]  ;;  %v74_v17 = vld [vmem:[%s375_s2 + $0x18] sm:$0xff] }
   0xc   :  { %90 = vmatpush.msra.mxu1 %v84_v5  ;;  %v75_v16 = vld [vmem:[%s375_s2 + $0x20] sm:$0xff]  ;;  %v73_v18 = vld [vmem:[%s375_s2 + $0x10] sm:$0xff]  ;;  %v72_v19 = vld [vmem:[%s375_s2 + $0x8] sm:$0xff] }
   0xd   :  { %65 = vmatpush.msra.mxu0 %v41_v6  ;;  %v71_v20 = vld [vmem:[%s375_s2] sm:$0xff]  ;;  %v124_v21 = vld [vmem:[%s376_s3 + $0x78] sm:$0xff]  ;;  %v123_v22 = vld [vmem:[%s376_s3 + $0x70] sm:$0xff] }
   0xe   :  { %165 = vmatmul.msk.f32.vlgmr.msra.gmra.mxu0 %vm46_vm0, %v37_v7  ;;  %91 = vmatpush.msra.mxu1 %v83_v8  ;;  %v122_v23 = vld [vmem:[%s376_s3 + $0x68] sm:$0xff]  ;;  %v121_v24 = vld [vmem:[%s376_s3 + $0x60] sm:$0xff]  ;;  %v120_v25 = vld [vmem:[%s376_s3 + $0x58] sm:$0xff] }
   0xf   :  { %126 = vmatpush.msra.mxu2 %v124_v21  ;;  %v119_v26 = vld [vmem:[%s376_s3 + $0x50] sm:$0xff]  ;;  %v118_v27 = vld [vmem:[%s376_s3 + $0x48] sm:$0xff]  ;;  %v117_v28 = vld [vmem:[%s376_s3 + $0x40] sm:$0xff] }
  0x10   :  { %92 = vmatpush.msra.mxu1 %v82_v9  ;;  %v116_v29 = vld [vmem:[%s376_s3 + $0x38] sm:$0xff]  ;;  %v115_v30 = vld [vmem:[%s376_s3 + $0x30] sm:$0xff]  ;;  %v114_v31 = vld [vmem:[%s376_s3 + $0x28] sm:$0xff] }
  0x11   :  { %127 = vmatpush.msra.mxu2 %v123_v22  ;;  %v113_v32 = vld [vmem:[%s376_s3 + $0x20] sm:$0xff]  ;;  %v112_v33 = vld [vmem:[%s376_s3 + $0x18] sm:$0xff]  ;;  %v111_v38 = vld [vmem:[%s376_s3 + $0x10] sm:$0xff] }
  0x12   :  { %93 = vmatpush.msra.mxu1 %v81_v10  ;;  %v170_v34 = vld [vmem:[%s377_s4] ss:$0 sm:$0xff]  ;;  %v110_v39 = vld [vmem:[%s376_s3 + $0x8] sm:$0xff]  ;;  %v171_v41 = vld [vmem:[%s377_s4 + $0x1] ss:$0 sm:$0xff] }
  0x13   :  { %128 = vmatpush.msra.mxu2 %v122_v23  ;;  %v109_v40 = vld [vmem:[%s376_s3] sm:$0xff] }
  0x14   :  { %94 = vmatpush.msra.mxu1 %v80_v11  ;;  %v172_v45 = vld [vmem:[%s377_s4 + $0x2] ss:$0 sm:$0xff] }
  0x15   :  { %129 = vmatpush.msra.mxu2 %v121_v24 }
  0x16   :  { %95 = vmatpush.msra.mxu1 %v79_v12 }
  0x17   :  { %130 = vmatpush.msra.mxu2 %v120_v25 }
  0x18   :  { %96 = vmatpush.msra.mxu1 %v78_v13 }
  0x19   :  { %131 = vmatpush.msra.mxu2 %v119_v26 }
  0x1a   :  { %97 = vmatpush.msra.mxu1 %v77_v14 }
  0x1b   :  { %132 = vmatpush.msra.mxu2 %v118_v27 }
  0x1c   :  { %98 = vmatpush.msra.mxu1 %v76_v15 }
  0x1d   :  { %133 = vmatpush.msra.mxu2 %v117_v28 }
  0x1e   :  { %99 = vmatpush.msra.mxu1 %v75_v16 }
  0x1f   :  { %134 = vmatpush.msra.mxu2 %v116_v29 }
  0x20   :  { %100 = vmatpush.msra.mxu1 %v74_v17 }
  0x21   :  { %135 = vmatpush.msra.mxu2 %v115_v30 }
  0x22   :  { %101 = vmatpush.msra.mxu1 %v73_v18 }
  0x23   :  { %136 = vmatpush.msra.mxu2 %v114_v31 }
  0x24   :  { %102 = vmatpush.msra.mxu1 %v72_v19 }
  0x25   :  { %137 = vmatpush.msra.mxu2 %v113_v32 }
  0x26   :  { %103 = vmatpush.msra.mxu1 %v71_v20 }
  0x27   :  { %138 = vmatpush.msra.mxu2 %v112_v33 }
  0x29   :  { %139 = vmatpush.msra.mxu2 %v111_v38 }
  0x2b   :  { %140 = vmatpush.msra.mxu2 %v110_v39 }
  0x2d   :  { %141 = vmatpush.msra.mxu2 %v109_v40 }
  0x8b   :  { %v67_v35 = vpop.f32.mrf.mxu0 }
  0x8c   :  { %v68_v36 = vadd.f32 %v170_v34, %v67_v35 }
  0x8e   :  { %v70_v37 = vmax.f32 %v68_v36, 0.0 }
  0x90   :  { %104 = vmatmul.f32.vlgmr.msra.gmra.mxu1 %v70_v37 }
 0x10d   :  { %v105_v42 = vpop.f32.mrf.mxu1 }
 0x10e   :  { %v106_v43 = vadd.f32 %v171_v41, %v105_v42 }
 0x110   :  { %v108_v44 = vmax.f32 %v106_v43, 0.0 }
 0x112   :  { %142 = vmatmul.f32.vlgmr.msra.gmra.mxu2 %v108_v44 }
 0x195   :  { %v143_v46 = vpop.f32.mrf.mxu2 }
 0x196   :  { %v144_v47 = vadd.f32 %v172_v45, %v143_v46 }
 0x198   :  { %147 = vst.msk [vmem:[#allocation5] sm:$0xff] %vm146_vm1, %v144_v47 }
 0x199   :  { %158 = dma.vmem_to_hbm [thread:$0]  %s154_s15, 128, %s156_s18, [#allocation4]  }
 0x19a   :  { %223 = dma.done.wait [#allocation4], 128  }
 0x19b   :  { %224 = vsyncadd [#allocation4], 4294967168 }
 0x19c   :  { %163 = vsyncpa [#allocation3], 1 }
 0x19d   :  { %164 = vsyncpa [#allocation4], 1 }

</bundles_post_ra>
